<compile_context>
chip_gen: v6e
topology: v6e:2x2x1
jax: 0.10.0
libtpu: 0.0.40
codegen_flags: <defaults>
</compile_context>

<pallas_src>
import functools

import jax
import jax.numpy as jnp
from jax.experimental import pallas as pl
from jax.experimental.pallas import tpu as pltpu


# ---------------------------------------------------------------------------
# Helpers
# ---------------------------------------------------------------------------
def _tpu_vmem_bytes():
    """Physical VMEM capacity (fallback: conservative v7x-sized 64 MiB)."""
    cap = 64 * 1024 * 1024
    try:
        info = pltpu.get_tpu_info()
        cap = int(getattr(info, "vmem_capacity_bytes", cap))
    except Exception:
        pass
    return cap


def _pick_tile(n, cap):
    """Largest tile t <= cap dividing n with t % 8 == 0 (or t == n)."""
    if n <= cap:
        return n
    for t in range(cap, 0, -1):
        if n % t == 0 and t % 8 == 0:
            return t
    return n   # no clean divisor: fall back to the full (untiled) dimension


# ---------------------------------------------------------------------------
# Kernel A: fused QKV projection.
# One lane-dense (TM, C) @ (C, 3C) matmul per grid step, f32 MXU accumulation.
# (qkv_bias=False, so no bias add.)
# ---------------------------------------------------------------------------
def _qkv_proj_kernel(x_ref, w_ref, o_ref):
    o_ref[...] = jnp.dot(
        x_ref[...], w_ref[...],
        preferred_element_type=jnp.float32).astype(o_ref.dtype)


# ---------------------------------------------------------------------------
# Kernel B: flash-style attention with online softmax + fused output projection.
# grid = (B, N // tq, N // tkv); kv axis last ("arbitrary"), others "parallel".
#   q_ref:  (1, H, tq,  D)   compute dtype (softmax scale pre-folded)
#   k_ref:  (1, H, tkv, D)
#   v_ref:  (1, H, tkv, D)
#   wp_ref: (C, C)           output projection weight
#   bp_ref: (1, C)           output projection bias (f32)
#   o_ref:  (1, tq, C)       lane-dense output tile (original input dtype)
#   m/l:    (H, tq, 1) f32   online-softmax running max / denom
#   acc:    (H, tq, D) f32   running weighted sum of V
# ---------------------------------------------------------------------------
def _flash_attn_proj_kernel(q_ref, k_ref, v_ref, wp_ref, bp_ref, o_ref,
                            m_ref, l_ref, acc_ref, *, approx_recip):
    ki = pl.program_id(2)

    @pl.when(ki == 0)
    def _():
        m_ref[...] = jnp.full(m_ref.shape, -jnp.inf, m_ref.dtype)
        l_ref[...] = jnp.zeros(l_ref.shape, l_ref.dtype)
        acc_ref[...] = jnp.zeros(acc_ref.shape, acc_ref.dtype)

    q = q_ref[0]                                    # (H, tq,  D)
    k = k_ref[0]                                    # (H, tkv, D)
    v = v_ref[0]                                    # (H, tkv, D)

    # Scores in f32; k^T never materialized (batched contraction over D).
    s = jnp.einsum('hqd,hkd->hqk', q, k,
                   preferred_element_type=jnp.float32)          # (H, tq, tkv)

    # Online softmax, statistics kept in f32 (do NOT downcast: v5e VPU/EUP
    # have no bf16 path).
    m_prev = m_ref[...]
    m_new = jnp.maximum(m_prev, jnp.max(s, axis=-1, keepdims=True))
    alpha = jnp.exp(m_prev - m_new)
    p = jnp.exp(s - m_new)                                       # (H, tq, tkv)
    l_ref[...] = alpha * l_ref[...] + jnp.sum(p, axis=-1, keepdims=True)
    acc_ref[...] = alpha * acc_ref[...] + jnp.einsum(
        'hqk,hkd->hqd', p.astype(v.dtype), v,
        preferred_element_type=jnp.float32)
    m_ref[...] = m_new

    @pl.when(ki == pl.num_programs(2) - 1)
    def _():
        H, tq, D = acc_ref.shape
        # Normalize (EUP reciprocal on the bf16 path), merge heads into the
        # lane axis (one-time XLU transpose+reshape), then a single
        # (tq, C) @ (C, C) output projection with K = C contraction.
        o = acc_ref[...] * pl.reciprocal(l_ref[...], approx=approx_recip)
        o = jnp.transpose(o, (1, 0, 2)).reshape(tq, H * D)       # (tq, C)
        y = jnp.dot(o.astype(wp_ref.dtype), wp_ref[...],
                    preferred_element_type=jnp.float32) + bp_ref[...]
        o_ref[0] = y.astype(o_ref.dtype)


# ---------------------------------------------------------------------------
# Wrapper
# ---------------------------------------------------------------------------
def attention_forward(x, w_qkv, w_proj, b_proj, *, num_heads,
                      compute_dtype=jnp.bfloat16):
    """Forward pass matching the PyTorch Attention module.

    x:      (B, N, C)
    w_qkv:  (C, 3C)  == torch qkv.weight.T, column layout [q | k | v]
    w_proj: (C, C)   == torch proj.weight.T
    b_proj: (C,)     == torch proj.bias
    """
    B, N, C = x.shape
    assert C % num_heads == 0, "dim should be divisible by num_heads"
    H = num_heads
    D = C // H
    scale = D ** (-0.5)

    # Per-generation sizing (v5e/v6e: 128 MiB VMEM; v7x: 64 MiB).
    vmem_cap = _tpu_vmem_bytes()
    vmem_limit = min((vmem_cap * 3) // 4, 100 * 1024 * 1024)
    if vmem_cap >= 100 * 1024 * 1024:          # v5e / v6e
        tm_cap, tq_cap, tkv_cap = 512, 512, 1024
    else:                                       # v7x
        tm_cap, tq_cap, tkv_cap = 256, 256, 512

    approx = jnp.dtype(compute_dtype) != jnp.dtype(jnp.float32)

    # One-time host-side weight prep: fold the softmax scale into the q
    # columns of the fused QKV weight, cast to the compute dtype.
    col_scale = jnp.concatenate(
        [jnp.full((C,), scale, jnp.float32), jnp.ones((2 * C,), jnp.float32)])
    w_qkv_s = (w_qkv.astype(jnp.float32) * col_scale).astype(compute_dtype)
    w_p = w_proj.astype(compute_dtype)                          # (C, C)
    b_p = b_proj.reshape(1, C).astype(jnp.float32)              # (1, C)
    x2d = x.reshape(B * N, C).astype(compute_dtype)             # (B*N, C)

    # --- Kernel A: fused QKV projection ------------------------------------
    rows = B * N
    tm = _pick_tile(rows, tm_cap)
    qkv = pl.pallas_call(
        _qkv_proj_kernel,
        out_shape=jax.ShapeDtypeStruct((rows, 3 * C), compute_dtype),
        grid=(rows // tm,),
        in_specs=[
            pl.BlockSpec((tm, C), lambda i: (i, 0)),
            pl.BlockSpec((C, 3 * C), lambda i: (0, 0)),
        ],
        out_specs=pl.BlockSpec((tm, 3 * C), lambda i: (i, 0)),
        compiler_params=pltpu.CompilerParams(
            dimension_semantics=("parallel",),
            vmem_limit_bytes=vmem_limit),
    )(x2d, w_qkv_s)

    # Layout plumbing (outside the kernel): split [q|k|v] columns and lay heads
    # out as (B, H, N, D) for the flash kernel.
    qkv = qkv.reshape(B, N, 3, H, D)
    qkv = jnp.transpose(qkv, (2, 0, 3, 1, 4))                   # (3, B, H, N, D)
    q, k, v = qkv[0], qkv[1], qkv[2]

    # --- Kernel B: flash attention + fused output projection ----------------
    tq = _pick_tile(N, tq_cap)
    tkv = _pick_tile(N, tkv_cap)
    kernel = functools.partial(_flash_attn_proj_kernel, approx_recip=approx)
    out = pl.pallas_call(
        kernel,
        out_shape=jax.ShapeDtypeStruct((B, N, C), x.dtype),
        grid=(B, N // tq, N // tkv),
        in_specs=[
            pl.BlockSpec((1, H, tq, D), lambda b, qi, ki: (b, 0, qi, 0)),
            pl.BlockSpec((1, H, tkv, D), lambda b, qi, ki: (b, 0, ki, 0)),
            pl.BlockSpec((1, H, tkv, D), lambda b, qi, ki: (b, 0, ki, 0)),
            pl.BlockSpec((C, C), lambda b, qi, ki: (0, 0)),
            pl.BlockSpec((1, C), lambda b, qi, ki: (0, 0)),
        ],
        out_specs=pl.BlockSpec((1, tq, C), lambda b, qi, ki: (b, qi, 0)),
        scratch_shapes=[
            pltpu.VMEM((H, tq, 1), jnp.float32),   # running max  m
            pltpu.VMEM((H, tq, 1), jnp.float32),   # running sum  l
            pltpu.VMEM((H, tq, D), jnp.float32),   # running acc
        ],
        compiler_params=pltpu.CompilerParams(
            dimension_semantics=("parallel", "parallel", "arbitrary"),
            vmem_limit_bytes=vmem_limit),
    )(q, k, v, w_p, b_p)
    return out


# ---------------------------------------------------------------------------
# Pure-JAX f32 reference mirroring the PyTorch forward pass.
# ---------------------------------------------------------------------------
def attention_reference(x, w_qkv, w_proj, b_proj, *, num_heads):
    B, N, C = x.shape
    head_dim = C // num_heads
    scale = head_dim ** (-0.5)
    qkv = x @ w_qkv                                              # (B, N, 3C)
    qkv = qkv.reshape(B, N, 3, num_heads, head_dim)
    qkv = jnp.transpose(qkv, (2, 0, 3, 1, 4))                    # (3, B, H, N, D)
    q, k, v = qkv[0], qkv[1], qkv[2]
    q = q * scale
    attn = q @ jnp.swapaxes(k, -2, -1)                           # (B, H, N, N)
    attn = jax.nn.softmax(attn, axis=-1)
    out = attn @ v                                               # (B, H, N, D)
    out = jnp.transpose(out, (0, 2, 1, 3)).reshape(B, N, C)
    return out @ w_proj + b_proj


if __name__ == "__main__":
    # Small shapes consistent with the module: B=2, N=16, C=64, heads=8.
    B, N, C = 2, 16, 64
    num_heads = 8

    key = jax.random.PRNGKey(0)
    kx, kw1, kw2, kb = jax.random.split(key, 4)

    x = jax.random.normal(kx, (B, N, C), dtype=jnp.float32)
    w_qkv = jax.random.normal(kw1, (C, 3 * C), dtype=jnp.float32) * 0.05
    w_proj = jax.random.normal(kw2, (C, C), dtype=jnp.float32) * 0.05
    b_proj = jax.random.normal(kb, (C,), dtype=jnp.float32) * 0.05

    ref = attention_reference(x, w_qkv, w_proj, b_proj, num_heads=num_heads)

    # f32 compute path: tight numerical check against the reference.
    out_f32 = attention_forward(x, w_qkv, w_proj, b_proj, num_heads=num_heads,
                                compute_dtype=jnp.float32)
    out_f32 = jax.block_until_ready(out_f32)
    assert out_f32.shape == (B, N, C)
    assert jnp.allclose(out_f32, ref, atol=2e-4, rtol=2e-4), "f32 mismatch vs reference"

    # bf16 compute path (production config): looser tolerance for bf16 inputs.
    out_bf16 = attention_forward(x, w_qkv, w_proj, b_proj, num_heads=num_heads,
                                 compute_dtype=jnp.bfloat16)
    out_bf16 = jax.block_until_ready(out_bf16)
    assert out_bf16.shape == (B, N, C)
    assert out_bf16.dtype == x.dtype
    assert jnp.allclose(out_bf16, ref, atol=3e-2, rtol=3e-2), "bf16 mismatch vs reference"

    print("KERNEL_OK")
</pallas_src>

<mosaic_0001>
module attributes {stable_mosaic.version = 11 : i64} {
  func.func @_qkv_proj_kernel(%arg0: i32, %arg1: memref<32x64xf32, #tpu.memory_space<vmem>>, %arg2: memref<64x192xf32, #tpu.memory_space<vmem>>, %arg3: memref<32x192xf32, #tpu.memory_space<vmem>>) attributes {dimension_semantics = [#tpu.dimension_semantics<parallel>], iteration_bounds = array<i64: 1>, scalar_prefetch = 0 : i64, scratch_operands = 0 : i64, tpu.core_type = #tpu.core_type<tc>, window_params = [{transform_indices = @transform_0, window_bounds = array<i64: 32, 64>}, {pipeline_mode = #tpu.pipeline_mode<synchronous>, transform_indices = @transform_1, window_bounds = array<i64: 64, 192>}, {transform_indices = @transform_2, window_bounds = array<i64: 32, 192>}]} {
    %c0 = arith.constant 0 : index
    %c0_0 = arith.constant 0 : index
    %0 = vector.load %arg1[%c0, %c0_0] : memref<32x64xf32, #tpu.memory_space<vmem>>, vector<32x64xf32>
    %c0_1 = arith.constant 0 : index
    %c0_2 = arith.constant 0 : index
    %1 = vector.load %arg2[%c0_1, %c0_2] : memref<64x192xf32, #tpu.memory_space<vmem>>, vector<64x192xf32>
    %cst = arith.constant dense<0.000000e+00> : vector<32x192xf32>
    %2 = tpu.matmul %0, %1, %cst {dimension_numbers = #tpu.dot_dimension_numbers<[1], [0], [0], [1], [0, 0, 1, 1], [], []>} : vector<32x64xf32>, vector<64x192xf32>, vector<32x192xf32> -> vector<32x192xf32>
    %c0_3 = arith.constant 0 : index
    %c0_4 = arith.constant 0 : index
    %3 = vector.load %arg3[%c0_3, %c0_4] : memref<32x192xf32, #tpu.memory_space<vmem>>, vector<32x192xf32>
    tpu.vector_store %arg3[%c0_3, %c0_4], %2 {strides = array<i32>} : memref<32x192xf32, #tpu.memory_space<vmem>>, vector<32x192xf32>,
    return
  }
  func.func @transform_0(%arg0: i32) -> (i32, i32) {
    %c0_i32 = arith.constant 0 : i32
    %c0_i32_0 = arith.constant 0 : i32
    return %arg0, %c0_i32 : i32, i32
  }
  func.func @transform_1(%arg0: i32) -> (i32, i32) {
    %c0_i32 = arith.constant 0 : i32
    %c0_i32_0 = arith.constant 0 : i32
    %c0_i32_1 = arith.constant 0 : i32
    return %c0_i32, %c0_i32_0 : i32, i32
  }
  func.func @transform_2(%arg0: i32) -> (i32, i32) {
    %c0_i32 = arith.constant 0 : i32
    %c0_i32_0 = arith.constant 0 : i32
    return %arg0, %c0_i32 : i32, i32
  }
}

</mosaic_0001>

<bundles_post_ra>
// kernel: tpu_custom_call.1
= control target key start
LH: loop header
LB: loop body
LE: loop exit
PB: predicated region body
PF: predicated region fallthrough
CT: control target
= control target key end

     0   :  { %7 = vsyncpa [#allocation3], 0  ;;  %s328_s0 = inlined_call_operand.hbm [shape: f32[32,64], index: 0, kind: input, shape index: {}]   ;;  %s329_s1 = inlined_call_operand.hbm [shape: f32[64,192], index: 1, kind: input, shape index: {}]   ;;  %s330_s2 = inlined_call_operand.hbm [shape: f32[32,192], index: 2, kind: output, shape index: {}]  }
   0x1   :  { %8 = vsyncpa [#allocation6], 0 }
   0x2   :  { %9 = vsyncpa [#allocation4], 0  ;;  %s282_s9 = smov [#allocation2]  }
   0x3   :  { %s15_s10 = sshll.u32 %s282_s9, 4  ;;  %s16_s10 = int_to_ptr.vmem [resolvable:$true] %s15_s10 }
   0x4   :  { %s224_s11 = scalar_lea.vmem %s16_s10, 512  ;;  %p229_p1 = scmp.lt.s32.totalorder %s16_s10, %s16_s10 }
   0x5   :  { %p225_p0 = scmp.ne.s32.totalorder %s16_s10, %s224_s11  ;;  %p230_p2 = scmp.lt.s32.totalorder %s224_s11, %s224_s11 }
   0x7   :  { %p231_p3 = por %p230_p2, %p229_p1 }
   0x9   :  { %p232_p4 = pnand %p231_p3, %p225_p0 }
   0xb   :  { %235 = shalt.err (!%p232_p4)
}
   0xc   :  { %s283_s12 = smov 128   ;;  %s284_s13 = smov 8  }
   0xd   :  { %21 = dma.hbm_to_vmem [thread:$0]  %s328_s0, 512, %s16_s10, [#allocation3], %s283_s12, %s283_s12, %s284_s13  }
   0xe   :  { %s285_s16 = smov [#allocation5]  }
   0xf   :  { %s27_s17 = sshll.u32 %s285_s16, 4  ;;  %s28_s17 = int_to_ptr.vmem [resolvable:$true] %s27_s17 }
  0x10   :  { %s244_s18 = scalar_lea.vmem %s28_s17, 2048  ;;  %p249_p6 = scmp.lt.s32.totalorder %s28_s17, %s28_s17 }
  0x11   :  { %p245_p5 = scmp.ne.s32.totalorder %s28_s17, %s244_s18  ;;  %p250_p7 = scmp.lt.s32.totalorder %s244_s18, %s244_s18 }
  0x13   :  { %p251_p8 = por %p250_p7, %p249_p6 }
  0x15   :  { %p252_p9 = pnand %p251_p8, %p245_p5 }
  0x17   :  { %255 = shalt.err (!%p252_p9)
}
  0x18   :  { %s286_s19 = smov 256   ;;  %s287_s20 = smov 16  }
  0x19   :  { %33 = dma.hbm_to_vmem [thread:$0]  %s329_s1, 2048, %s28_s17, [#allocation6], %s286_s19, %s286_s19, %s287_s20  }
  0x1a   :  { %276 = dma.done.wait [#allocation3], 512  }
  0x1b   :  { %277 = vsyncadd [#allocation3], 4294966784 }
  0x1c   :  { %278 = dma.done.wait [#allocation6], 2048  }
  0x1d   :  { %279 = vsyncadd [#allocation6], 4294965248  ;;  %v288_v0 = vmov 0.0   ;;  %v59_v1 = vld [vmem:[#allocation5 + $0x78] sm:$0xff]  ;;  %v58_v2 = vld [vmem:[#allocation5 + $0x70] sm:$0xff]  ;;  %vm60_vm0 = vcmask 523264  }
  0x1e   :  { %137 = vmatprep.mubr.f32.mxu0 %v288_v0  ;;  %149 = vmatprep.mubr.f32.mxu1 %v288_v0  ;;  %v57_v3 = vld [vmem:[#allocation5 + $0x68] sm:$0xff]  ;;  %v56_v4 = vld [vmem:[#allocation5 + $0x60] sm:$0xff]  ;;  %v55_v5 = vld [vmem:[#allocation5 + $0x58] sm:$0xff]  ;;  %s289_s0 = smov [#allocation7]  }
  0x1f   :  { %89 = vmatprep.subr.mxu0 %v59_v1  ;;  %192 = vmatprep.subr.mxu1 %v59_v1  ;;  %v54_v6 = vld [vmem:[#allocation5 + $0x50] sm:$0xff]  ;;  %v53_v7 = vld [vmem:[#allocation5 + $0x48] sm:$0xff]  ;;  %v52_v8 = vld [vmem:[#allocation5 + $0x40] sm:$0xff]  ;;  %s175_s1 = sshll.u32 %s289_s0, 4  ;;  %s176_s1 = int_to_ptr.vmem [resolvable:$true] %s175_s1 }
  0x20   :  { %90 = vmatpush1.msra.mxu0 %v58_v2  ;;  %200 = vmatpush1.msra.mxu1 %v58_v2  ;;  %v51_v9 = vld [vmem:[#allocation5 + $0x38] sm:$0xff]  ;;  %v50_v10 = vld [vmem:[#allocation5 + $0x30] sm:$0xff]  ;;  %v49_v11 = vld [vmem:[#allocation5 + $0x28] sm:$0xff]  ;;  %s256_s23 = scalar_lea.vmem %s176_s1, 1024  ;;  %p261_p11 = scmp.lt.s32.totalorder %s176_s1, %s176_s1 }
  0x21   :  { %91 = vmatprep.subr.mxu0 %v57_v3  ;;  %193 = vmatprep.subr.mxu1 %v57_v3  ;;  %v48_v12 = vld [vmem:[#allocation5 + $0x20] sm:$0xff]  ;;  %v47_v13 = vld [vmem:[#allocation5 + $0x18] sm:$0xff]  ;;  %v46_v14 = vld [vmem:[#allocation5 + $0x10] sm:$0xff]  ;;  %p257_p10 = scmp.ne.s32.totalorder %s176_s1, %s256_s23  ;;  %p262_p12 = scmp.lt.s32.totalorder %s256_s23, %s256_s23 }
  0x22   :  { %92 = vmatpush1.msra.mxu0 %v56_v4  ;;  %201 = vmatpush1.msra.mxu1 %v56_v4  ;;  %v45_v15 = vld [vmem:[#allocation5 + $0x8] sm:$0xff]  ;;  %v44_v16 = vld [vmem:[#allocation5] sm:$0xff]  ;;  %v42_v18 = vld [vmem:[#allocation2 + $0x10] sm:$0xff] }
  0x23   :  { %93 = vmatprep.subr.mxu0 %v55_v5  ;;  %194 = vmatprep.subr.mxu1 %v55_v5  ;;  %v40_v17 = vld [vmem:[#allocation2] sm:$0xff]  ;;  %v41_v19 = vld [vmem:[#allocation2 + $0x8] sm:$0xff]  ;;  %v43_v20 = vld [vmem:[#allocation2 + $0x18] sm:$0xff]  ;;  %p263_p13 = por %p262_p12, %p261_p11 }
  0x24   :  { %94 = vmatpush1.msra.mxu0 %v54_v6  ;;  %202 = vmatpush1.msra.mxu1 %v54_v6 }
  0x25   :  { %95 = vmatprep.subr.mxu0 %v53_v7  ;;  %195 = vmatprep.subr.mxu1 %v53_v7  ;;  %p264_p0 = pnand %p263_p13, %p257_p10 }
  0x26   :  { %96 = vmatpush1.msra.mxu0 %v52_v8  ;;  %203 = vmatpush1.msra.mxu1 %v52_v8 }
  0x27   :  { %97 = vmatprep.subr.mxu0 %v51_v9  ;;  %196 = vmatprep.subr.mxu1 %v51_v9 }
  0x28   :  { %98 = vmatpush1.msra.mxu0 %v50_v10  ;;  %204 = vmatpush1.msra.mxu1 %v50_v10 }
  0x29   :  { %99 = vmatprep.subr.mxu0 %v49_v11  ;;  %197 = vmatprep.subr.mxu1 %v49_v11 }
  0x2a   :  { %100 = vmatpush1.msra.mxu0 %v48_v12  ;;  %205 = vmatpush1.msra.mxu1 %v48_v12 }
  0x2b   :  { %101 = vmatprep.subr.mxu0 %v47_v13  ;;  %198 = vmatprep.subr.mxu1 %v47_v13 }
  0x2c   :  { %102 = vmatpush1.msra.mxu0 %v46_v14  ;;  %206 = vmatpush1.msra.mxu1 %v46_v14 }
  0x2d   :  { %103 = vmatprep.subr.mxu0 %v45_v15  ;;  %199 = vmatprep.subr.mxu1 %v45_v15 }
  0x2e   :  { %104 = vmatpush1.msra.mxu0 %v44_v16  ;;  %207 = vmatpush1.msra.mxu1 %v44_v16 }
  0x2f   :  { %188 = vmatmul.mubr.msk.f32.vlgmr.msra.gmra.mxu0 %vm60_vm0, %v40_v17  ;;  %190 = vmatmul.mubr.msk.f32.vlgmr.msra.gmra.mxu1 %vm60_vm0, %v42_v18 }
  0x30   :  { %143 = vmatprep.mubr.f32.mxu0 %v288_v0  ;;  %155 = vmatprep.mubr.f32.mxu1 %v288_v0 }
  0x33   :  { %189 = vmatmul.mubr.msk.f32.gmra.mxu0 %vm60_vm0, %v41_v19  ;;  %191 = vmatmul.mubr.msk.f32.gmra.mxu1 %vm60_vm0, %v43_v20 }
  0xef   :  { %v139_v21 = vpop.f32.mrf.mxu0  ;;  %v151_v22 = vpop.f32.mrf.mxu1 }
  0xf0   :  { %162 = vst [vmem:[#allocation7] sm:$0xff] %v139_v21  ;;  %166 = vst [vmem:[#allocation7 + $0x20] sm:$0xff] %v151_v22 }
  0xf1   :  { %v141_v23 = vpop.f32.mrf.mxu0  ;;  %v153_v24 = vpop.f32.mrf.mxu1 }
  0xf2   :  { %163 = vst.msk [vmem:[#allocation7 + $0x8] sm:$0xff] %vm60_vm0, %v141_v23  ;;  %167 = vst.msk [vmem:[#allocation7 + $0x28] sm:$0xff] %vm60_vm0, %v153_v24 }
  0xf3   :  { %v145_v25 = vpop.f32.mrf.mxu0  ;;  %v157_v26 = vpop.f32.mrf.mxu1 }
  0xf4   :  { %164 = vst [vmem:[#allocation7 + $0x10] sm:$0xff] %v145_v25  ;;  %168 = vst [vmem:[#allocation7 + $0x30] sm:$0xff] %v157_v26 }
  0xf5   :  { %v147_v27 = vpop.f32.mrf.mxu0  ;;  %v159_v28 = vpop.f32.mrf.mxu1 }
  0xf6   :  { %165 = vst.msk [vmem:[#allocation7 + $0x18] sm:$0xff] %vm60_vm0, %v147_v27  ;;  %169 = vst.msk [vmem:[#allocation7 + $0x38] sm:$0xff] %vm60_vm0, %v159_v28 }
  0xf7   :  { %267 = shalt.err (!%p264_p0)
}
  0xf8   :  { %181 = dma.vmem_to_hbm [thread:$0]  %s176_s1, 1024, %s330_s2, [#allocation4], %s286_s19, %s286_s19, %s287_s20  }
  0xf9   :  { %280 = dma.done.wait [#allocation4], 1024  }
  0xfa   :  { %281 = vsyncadd [#allocation4], 4294966272 }
  0xfb   :  { %185 = vsyncpa [#allocation3], 1 }
  0xfc   :  { %186 = vsyncpa [#allocation6], 1 }
  0xfd   :  { %187 = vsyncpa [#allocation4], 1 }

</bundles_post_ra>
